<compile_context>
chip_gen: v5e
topology: v5e:2x2
jax: 0.10.0
libtpu: 0.0.40
codegen_flags: <defaults>
</compile_context>

<pallas_src>
import functools

import jax
import jax.numpy as jnp
from jax.experimental import pallas as pl
from jax.experimental.pallas import tpu as pltpu

# class weights from the PyTorch module's __init__: torch.FloatTensor([0.9, 1.1])
CLASS_W0 = 0.9
CLASS_W1 = 1.1


def _seg_ce_kernel(pred_ref, tgt_ref, out_ref, num_acc, den_acc, *, valid_h, tile_h):
    """One (batch b, H-tile i) step of the weighted 2-class CE reduction."""
    i = pl.program_id(1)

    @pl.when(i == 0)
    def _():
        num_acc[...] = jnp.zeros_like(num_acc)
        den_acc[...] = jnp.zeros_like(den_acc)

    l0 = pred_ref[0, 0]                      # (TILE_H, W) f32 logits, class 0
    l1 = pred_ref[0, 1]                      # (TILE_H, W) f32 logits, class 1
    t1 = tgt_ref[0].astype(jnp.float32)      # (TILE_H, W): 1.0 where target==1 else 0.0

    # Validity mask for the (possibly ragged) last H-tile; applied to BOTH the
    # numerator and denominator. The jnp.where on x also kills any NaN/Inf garbage
    # the out-of-bounds part of the trailing block may contain.
    row = jax.lax.broadcasted_iota(jnp.int32, l0.shape, 0) + i * tile_h
    valid = row < valid_h
    m = valid.astype(jnp.float32)

    # -log p_t = softplus(l_other - l_t), stable form: max(x,0) + log(1 + exp(-|x|)).
    x = (1.0 - 2.0 * t1) * (l1 - l0)         # = l1-l0 if t==0, l0-l1 if t==1
    x = jnp.where(valid, x, 0.0)
    nll = jnp.maximum(x, 0.0) + jnp.log(1.0 + jnp.exp(-jnp.abs(x)))

    w = (CLASS_W0 + (CLASS_W1 - CLASS_W0) * t1) * m   # per-pixel class weight (0 if padded)

    # Pure elementwise accumulation in VMEM -- no per-step cross-lane reduction.
    num_acc[...] += w * nll
    den_acc[...] += w

    @pl.when(i == pl.num_programs(1) - 1)
    def _():
        num_t = jnp.sum(num_acc[...])        # sum_i w_i * (-log p_i[t_i])  (this batch)
        den_t = jnp.sum(den_acc[...])        # sum_i w_i                    (this batch)
        rows = jax.lax.broadcasted_iota(jnp.int32, (2, 128), 0)
        out_ref[0] = jnp.where(rows == 0, num_t, den_t)   # row 0 = num, row 1 = den


def _choose_tile_h(H, W, target_block_bytes=4 * 1024 * 1024):
    """Pick an H-tile so one logits block is ~4 MB: big enough to amortize the ~0.35 us
    per-grid-step overhead, small enough that double-buffered inputs + accumulators stay
    well under the 32 MiB scoped-VMEM default (and v7x's 64 MiB physical VMEM)."""
    th = target_block_bytes // (2 * W * 4)   # rows of f32 logits (2 classes)
    th = max(32, (th // 32) * 32)            # multiple of 32: legal for f32/int32/int8 blocks
    if th >= H:
        return H                             # full-dim block is always legal
    return th


def _weighted_ce_pallas(pred, tgt, tile_h):
    """pred: [B, 2, H, W] f32; tgt: [B, H, W] int{8,32} class ids in {0,1}.

    Returns (B, 2, 128) f32 partials: [:, 0, 0] = per-batch weighted-NLL sum,
    [:, 1, 0] = per-batch weight sum.
    """
    B, K, H, W = pred.shape
    n_h = pl.cdiv(H, tile_h)
    kernel = functools.partial(_seg_ce_kernel, valid_h=H, tile_h=tile_h)
    return pl.pallas_call(
        kernel,
        out_shape=jax.ShapeDtypeStruct((B, 2, 128), jnp.float32),
        grid_spec=pltpu.PrefetchScalarGridSpec(
            num_scalar_prefetch=0,
            grid=(B, n_h),
            in_specs=[
                pl.BlockSpec((1, 2, tile_h, W), lambda b, i: (b, 0, i, 0)),
                pl.BlockSpec((1, tile_h, W), lambda b, i: (b, i, 0)),
            ],
            out_specs=pl.BlockSpec((1, 2, 128), lambda b, i: (b, 0, 0)),
            scratch_shapes=[
                pltpu.VMEM((tile_h, W), jnp.float32),   # weighted-NLL accumulator
                pltpu.VMEM((tile_h, W), jnp.float32),   # weight-sum accumulator
            ],
        ),
        compiler_params=pltpu.CompilerParams(
            dimension_semantics=("parallel", "arbitrary")),
    )(pred, tgt)


def _interp_matrix(out_size, in_size):
    """[out_size, in_size] interpolation matrix for bilinear, align_corners=True."""
    if out_size == in_size:
        return jnp.eye(out_size, dtype=jnp.float32)
    if out_size == 1:
        src = jnp.zeros((1,), jnp.float32)
    else:
        src = jnp.linspace(0.0, float(in_size - 1), out_size)
    i0 = jnp.floor(src).astype(jnp.int32)
    i1 = jnp.minimum(i0 + 1, in_size - 1)
    frac = (src - i0.astype(jnp.float32))[:, None]
    return (jax.nn.one_hot(i0, in_size, dtype=jnp.float32) * (1.0 - frac)
            + jax.nn.one_hot(i1, in_size, dtype=jnp.float32) * frac)


def _bilinear_resize_matmul(x, out_h, out_w):
    """F.interpolate(mode='bilinear', align_corners=True) on NCHW as two dense matmuls."""
    B, C, H, W = x.shape
    if (H, W) == (out_h, out_w):
        return x
    ry = _interp_matrix(out_h, H)            # [out_h, H]
    cx = _interp_matrix(out_w, W)            # [out_w, W]
    return jnp.einsum('Hh,bchw,Ww->bcHW', ry, x, cx)


@jax.jit
def seg_ce_loss(pred, target_mask):
    """pred: [B, 2, h, w] float logits (NCHW); target_mask: [B, H, W] integer class ids
    in {0, 1} (int8 recommended to minimize HBM traffic; any int dtype works).

    Returns {'total_loss': scalar}, matching
    nn.CrossEntropyLoss(weight=[0.9, 1.1])(F.interpolate(pred, (H, W), 'bilinear',
                                                         align_corners=True), mask).
    """
    B, K, h, w = pred.shape
    assert K == 2, "SegCELoss is a 2-class loss (weights [0.9, 1.1])"
    H, W = target_mask.shape[-2], target_mask.shape[-1]
    # TODO(synk): fuse the bilinear-resize matmuls into the Pallas kernel to avoid one
    # HBM round trip of the upsampled logits.
    pred = _bilinear_resize_matmul(pred.astype(jnp.float32), H, W)

    tile_h = _choose_tile_h(H, W)
    partials = _weighted_ce_pallas(pred, target_mask, tile_h)
    num = jnp.sum(partials[:, 0, 0])
    den = jnp.sum(partials[:, 1, 0])
    return {"total_loss": num / den}


# ---------------------------------------------------------------------------
# Plain-JAX reference (gather-based bilinear + log_softmax), for validation only.
# ---------------------------------------------------------------------------
def _bilinear_resize_gather_ref(x, out_h, out_w):
    B, C, H, W = x.shape
    if (H, W) == (out_h, out_w):
        return x
    ys = jnp.linspace(0.0, H - 1, out_h) if out_h > 1 else jnp.zeros((out_h,), jnp.float32)
    xs = jnp.linspace(0.0, W - 1, out_w) if out_w > 1 else jnp.zeros((out_w,), jnp.float32)
    y0 = jnp.floor(ys).astype(jnp.int32)
    x0 = jnp.floor(xs).astype(jnp.int32)
    y1 = jnp.minimum(y0 + 1, H - 1)
    x1 = jnp.minimum(x0 + 1, W - 1)
    wy = (ys - y0.astype(jnp.float32))[:, None]
    wx = (xs - x0.astype(jnp.float32))[None, :]

    def g(yi, xi):
        return x[:, :, yi, :][:, :, :, xi]

    top = g(y0, x0) * (1.0 - wx) + g(y0, x1) * wx
    bot = g(y1, x0) * (1.0 - wx) + g(y1, x1) * wx
    return top * (1.0 - wy) + bot * wy


def _reference_loss(pred, target_mask):
    H, W = target_mask.shape[-2], target_mask.shape[-1]
    pred = _bilinear_resize_gather_ref(pred.astype(jnp.float32), H, W)
    logp = jax.nn.log_softmax(pred, axis=1)
    t = target_mask.astype(jnp.int32)
    picked = jnp.take_along_axis(logp, t[:, None, :, :], axis=1)[:, 0]
    w = jnp.array([CLASS_W0, CLASS_W1], jnp.float32)[t]
    return -(w * picked).sum() / w.sum()


if __name__ == "__main__":
    key = jax.random.PRNGKey(0)
    k1, k2 = jax.random.split(key)

    B, K, h, w = 2, 2, 8, 8          # pred at lower resolution -> exercises bilinear path
    H, W = 16, 16                    # target mask resolution

    pred = jax.random.normal(k1, (B, K, h, w), dtype=jnp.float32)
    mask = jax.random.randint(k2, (B, H, W), 0, 2, dtype=jnp.int32).astype(jnp.int8)

    out = seg_ce_loss(pred, mask)
    loss = jax.block_until_ready(out["total_loss"])

    ref = jax.block_until_ready(_reference_loss(pred, mask))
    assert jnp.allclose(loss, ref, rtol=1e-5, atol=1e-5), (loss, ref)

    print("KERNEL_OK")
</pallas_src>

<mosaic_0001>
module attributes {stable_mosaic.version = 11 : i64} {
  func.func @_seg_ce_kernel(%arg0: i32, %arg1: i32, %arg2: memref<1x2x16x16xf32, #tpu.memory_space<vmem>>, %arg3: memref<1x16x16xi8, #tpu.memory_space<vmem>>, %arg4: memref<1x2x128xf32, #tpu.memory_space<vmem>>, %arg5: memref<16x16xf32, #tpu.memory_space<vmem>>, %arg6: memref<16x16xf32, #tpu.memory_space<vmem>>) attributes {dimension_semantics = [#tpu.dimension_semantics<parallel>, #tpu.dimension_semantics<arbitrary>], iteration_bounds = array<i64: 2, 1>, scalar_prefetch = 0 : i64, scratch_operands = 2 : i64, tpu.core_type = #tpu.core_type<tc>, window_params = [{transform_indices = @transform_0, window_bounds = array<i64: 1, 2, 16, 16>}, {transform_indices = @transform_1, window_bounds = array<i64: 1, 16, 16>}, {transform_indices = @transform_2, window_bounds = array<i64: 1, 2, 128>}]} {
    %c0_i32 = arith.constant 0 : i32
    %0 = arith.cmpi eq, %arg1, %c0_i32 : i32
    %1 = arith.extui %0 : i1 to i32
    %c0_i32_0 = arith.constant 0 : i32
    %2 = arith.cmpi ne, %1, %c0_i32_0 : i32
    scf.if %2 {
      %cst_28 = arith.constant 0.000000e+00 : f32
      %51 = vector.broadcast %cst_28 : f32 to vector<16x16xf32>
      %c0_29 = arith.constant 0 : index
      %c0_30 = arith.constant 0 : index
      %52 = vector.load %arg5[%c0_29, %c0_30] : memref<16x16xf32, #tpu.memory_space<vmem>>, vector<16x16xf32>
      tpu.vector_store %arg5[%c0_29, %c0_30], %51 {strides = array<i32>} : memref<16x16xf32, #tpu.memory_space<vmem>>, vector<16x16xf32>,
      %cst_31 = arith.constant 0.000000e+00 : f32
      %53 = vector.broadcast %cst_31 : f32 to vector<16x16xf32>
      %c0_32 = arith.constant 0 : index
      %c0_33 = arith.constant 0 : index
      %54 = vector.load %arg6[%c0_32, %c0_33] : memref<16x16xf32, #tpu.memory_space<vmem>>, vector<16x16xf32>
      tpu.vector_store %arg6[%c0_32, %c0_33], %53 {strides = array<i32>} : memref<16x16xf32, #tpu.memory_space<vmem>>, vector<16x16xf32>,
    } else {
    }
    %c0 = arith.constant 0 : index
    %c0_1 = arith.constant 0 : index
    %c0_2 = arith.constant 0 : index
    %c0_3 = arith.constant 0 : index
    %3 = vector.load %arg2[%c0, %c0_1, %c0_2, %c0_3] : memref<1x2x16x16xf32, #tpu.memory_space<vmem>>, vector<1x1x16x16xf32>
    %4 = vector.shape_cast %3 : vector<1x1x16x16xf32> to vector<16x16xf32>
    %c0_4 = arith.constant 0 : index
    %c1 = arith.constant 1 : index
    %c0_5 = arith.constant 0 : index
    %c0_6 = arith.constant 0 : index
    %5 = vector.load %arg2[%c0_4, %c1, %c0_5, %c0_6] : memref<1x2x16x16xf32, #tpu.memory_space<vmem>>, vector<1x1x16x16xf32>
    %6 = vector.shape_cast %5 : vector<1x1x16x16xf32> to vector<16x16xf32>
    %c0_7 = arith.constant 0 : index
    %c0_8 = arith.constant 0 : index
    %c0_9 = arith.constant 0 : index
    %7 = vector.load %arg3[%c0_7, %c0_8, %c0_9] : memref<1x16x16xi8, #tpu.memory_space<vmem>>, vector<1x16x16xi8>
    %8 = vector.shape_cast %7 : vector<1x16x16xi8> to vector<16x16xi8>
    %9 = arith.sitofp %8 : vector<16x16xi8> to vector<16x16xf32>
    %10 = tpu.iota {dimensions = array<i32: 0>} : vector<16x16xi32>
    %c16_i32 = arith.constant 16 : i32
    %11 = arith.muli %arg1, %c16_i32 : i32
    %12 = vector.broadcast %11 : i32 to vector<16x16xi32>
    %13 = arith.addi %10, %12 : vector<16x16xi32>
    %c16_i32_10 = arith.constant 16 : i32
    %14 = vector.broadcast %c16_i32_10 : i32 to vector<16x16xi32>
    %15 = arith.cmpi slt, %13, %14 : vector<16x16xi32>
    %16 = arith.extui %15 : vector<16x16xi1> to vector<16x16xi32>
    %17 = arith.sitofp %16 : vector<16x16xi32> to vector<16x16xf32>
    %cst = arith.constant 2.000000e+00 : f32
    %18 = vector.broadcast %cst : f32 to vector<16x16xf32>
    %19 = arith.mulf %18, %9 : vector<16x16xf32>
    %cst_11 = arith.constant 1.000000e+00 : f32
    %20 = vector.broadcast %cst_11 : f32 to vector<16x16xf32>
    %21 = arith.subf %20, %19 : vector<16x16xf32>
    %22 = arith.subf %6, %4 : vector<16x16xf32>
    %23 = arith.mulf %21, %22 : vector<16x16xf32>
    %cst_12 = arith.constant 0.000000e+00 : f32
    %24 = vector.broadcast %cst_12 : f32 to vector<16x16xf32>
    %25 = arith.select %15, %23, %24 : vector<16x16xi1>, vector<16x16xf32>
    %cst_13 = arith.constant 0.000000e+00 : f32
    %26 = vector.broadcast %cst_13 : f32 to vector<16x16xf32>
    %27 = arith.maximumf %25, %26 : vector<16x16xf32>
    %28 = math.absf %25 : vector<16x16xf32>
    %cst_14 = arith.constant 0.000000e+00 : f32
    %29 = vector.broadcast %cst_14 : f32 to vector<16x16xf32>
    %30 = arith.subf %29, %28 : vector<16x16xf32>
    %31 = math.exp %30 : vector<16x16xf32>
    %cst_15 = arith.constant 1.000000e+00 : f32
    %32 = vector.broadcast %cst_15 : f32 to vector<16x16xf32>
    %33 = arith.addf %32, %31 : vector<16x16xf32>
    %34 = math.log %33 : vector<16x16xf32>
    %35 = arith.addf %27, %34 : vector<16x16xf32>
    %cst_16 = arith.constant 2.000000e-01 : f32
    %36 = vector.broadcast %cst_16 : f32 to vector<16x16xf32>
    %37 = arith.mulf %36, %9 : vector<16x16xf32>
    %cst_17 = arith.constant 0.899999976 : f32
    %38 = vector.broadcast %cst_17 : f32 to vector<16x16xf32>
    %39 = arith.addf %38, %37 : vector<16x16xf32>
    %40 = arith.mulf %39, %17 : vector<16x16xf32>
    %c0_18 = arith.constant 0 : index
    %c0_19 = arith.constant 0 : index
    %41 = vector.load %arg5[%c0_18, %c0_19] : memref<16x16xf32, #tpu.memory_space<vmem>>, vector<16x16xf32>
    %42 = arith.mulf %40, %35 : vector<16x16xf32>
    %43 = arith.addf %41, %42 : vector<16x16xf32>
    %c0_20 = arith.constant 0 : index
    %c0_21 = arith.constant 0 : index
    %44 = vector.load %arg5[%c0_20, %c0_21] : memref<16x16xf32, #tpu.memory_space<vmem>>, vector<16x16xf32>
    tpu.vector_store %arg5[%c0_20, %c0_21], %43 {strides = array<i32>} : memref<16x16xf32, #tpu.memory_space<vmem>>, vector<16x16xf32>,
    %c0_22 = arith.constant 0 : index
    %c0_23 = arith.constant 0 : index
    %45 = vector.load %arg6[%c0_22, %c0_23] : memref<16x16xf32, #tpu.memory_space<vmem>>, vector<16x16xf32>
    %46 = arith.addf %45, %40 : vector<16x16xf32>
    %c0_24 = arith.constant 0 : index
    %c0_25 = arith.constant 0 : index
    %47 = vector.load %arg6[%c0_24, %c0_25] : memref<16x16xf32, #tpu.memory_space<vmem>>, vector<16x16xf32>
    tpu.vector_store %arg6[%c0_24, %c0_25], %46 {strides = array<i32>} : memref<16x16xf32, #tpu.memory_space<vmem>>, vector<16x16xf32>,
    %c0_i32_26 = arith.constant 0 : i32
    %48 = arith.cmpi eq, %arg1, %c0_i32_26 : i32
    %49 = arith.extui %48 : i1 to i32
    %c0_i32_27 = arith.constant 0 : i32
    %50 = arith.cmpi ne, %49, %c0_i32_27 : i32
    scf.if %50 {
      %c0_28 = arith.constant 0 : index
      %c0_29 = arith.constant 0 : index
      %51 = vector.load %arg5[%c0_28, %c0_29] : memref<16x16xf32, #tpu.memory_space<vmem>>, vector<16x16xf32>
      %52 = vector.shape_cast %51 : vector<16x16xf32> to vector<1x16x16xf32>
      %cst_30 = arith.constant dense<0.000000e+00> : vector<1xf32>
      %53 = vector.multi_reduction <add>, %52, %cst_30 [1, 2] : vector<1x16x16xf32> to vector<1xf32>
      %54 = vector.shape_cast %53 : vector<1xf32> to vector<1x1x1xf32>
      %55 = vector.extract %54[0, 0, 0] : f32 from vector<1x1x1xf32>
      %c0_31 = arith.constant 0 : index
      %c0_32 = arith.constant 0 : index
      %56 = vector.load %arg6[%c0_31, %c0_32] : memref<16x16xf32, #tpu.memory_space<vmem>>, vector<16x16xf32>
      %57 = vector.shape_cast %56 : vector<16x16xf32> to vector<1x16x16xf32>
      %cst_33 = arith.constant dense<0.000000e+00> : vector<1xf32>
      %58 = vector.multi_reduction <add>, %57, %cst_33 [1, 2] : vector<1x16x16xf32> to vector<1xf32>
      %59 = vector.shape_cast %58 : vector<1xf32> to vector<1x1x1xf32>
      %60 = vector.extract %59[0, 0, 0] : f32 from vector<1x1x1xf32>
      %61 = tpu.iota {dimensions = array<i32: 0>} : vector<2x128xi32>
      %c0_i32_34 = arith.constant 0 : i32
      %62 = vector.broadcast %c0_i32_34 : i32 to vector<2x128xi32>
      %63 = arith.cmpi eq, %61, %62 : vector<2x128xi32>
      %64 = vector.broadcast %55 : f32 to vector<2x128xf32>
      %65 = vector.broadcast %60 : f32 to vector<2x128xf32>
      %66 = arith.select %63, %64, %65 : vector<2x128xi1>, vector<2x128xf32>
      %c0_35 = arith.constant 0 : index
      %c0_36 = arith.constant 0 : index
      %c0_37 = arith.constant 0 : index
      %67 = vector.load %arg4[%c0_35, %c0_36, %c0_37] : memref<1x2x128xf32, #tpu.memory_space<vmem>>, vector<1x2x128xf32>
      %68 = vector.shape_cast %67 : vector<1x2x128xf32> to vector<2x128xf32>
      %69 = vector.shape_cast %66 : vector<2x128xf32> to vector<1x2x128xf32>
      tpu.vector_store %arg4[%c0_35, %c0_36, %c0_37], %69 {strides = array<i32>} : memref<1x2x128xf32, #tpu.memory_space<vmem>>, vector<1x2x128xf32>,
    } else {
    }
    return
  }
  func.func @transform_0(%arg0: i32, %arg1: i32) -> (i32, i32, i32, i32) {
    %c0_i32 = arith.constant 0 : i32
    %c0_i32_0 = arith.constant 0 : i32
    %c0_i32_1 = arith.constant 0 : i32
    return %arg0, %c0_i32, %arg1, %c0_i32_0 : i32, i32, i32, i32
  }
  func.func @transform_1(%arg0: i32, %arg1: i32) -> (i32, i32, i32) {
    %c0_i32 = arith.constant 0 : i32
    %c0_i32_0 = arith.constant 0 : i32
    return %arg0, %arg1, %c0_i32 : i32, i32, i32
  }
  func.func @transform_2(%arg0: i32, %arg1: i32) -> (i32, i32, i32) {
    %c0_i32 = arith.constant 0 : i32
    %c0_i32_0 = arith.constant 0 : i32
    %c0_i32_1 = arith.constant 0 : i32
    return %arg0, %c0_i32, %c0_i32_0 : i32, i32, i32
  }
}

</mosaic_0001>

<bundles_post_ra>
// kernel: seg_ce_loss.1
= control target key start
LH: loop header
LB: loop body
LE: loop exit
PB: predicated region body
PF: predicated region fallthrough
CT: control target
= control target key end

     0   :  { %s506_s9 = smov 0   ;;  %s508_s10 = smov 0   ;;  %s559_s0 = inlined_call_operand.vmem [shape: f32[2,2,16,16], index: 0, kind: input, shape index: {}]   ;;  %s560_s1 = inlined_call_operand.vmem [shape: s8[2,16,16], index: 1, kind: input, shape index: {}]   ;;  %s561_s2 = inlined_call_operand.vmem [shape: f32[2,2,128], index: 2, kind: output, shape index: {}]  }
   0x1   :  { %s510_s11 = smov 0  }
   0x2 LB: > { %s24_s12 = sadd.s32 1, %s484_s10  ;;  %p413_p0 = scmp.ge.s32.totalorder %s488_s11, 1  ;;  %s488_s11 = sphi %s510_s11, %s12_s11   ;;  %s484_s10 = sphi %s508_s10, %s563_s10   ;;  %s480_s9 = sphi %s506_s9, %s562_s9  }
   0x3   : > { %p26_p1 = scmp.ge.s32.totalorder %s24_s12, 2  ;;  %p148_p2 = scmp.lt.s32.totalorder %s488_s11, 3 }
   0x5   : > { %s565_s12 = smov (%p26_p1, %s24_s12), 0  ;;  %p149_p3 = pnand %p413_p0, %p148_p2 }
   0x6   : > { %p183_p4 = scmp.lt.s32.totalorder (!%p149_p3), %s480_s9, 1 }
   0x7   : > { %152 = sbr.rel (%p149_p3) target bundleno = 257 (0x101), region = 28 }
   0xc   : > { %vm210_vm0 = vcmask 130048   ;;  %v490_v0 = vmov 0.0   ;;  %s567_s9 = smov (!%p183_p4, %s480_s9), 1 }
   0xd   : > { %211 = vst.msk [vmem:[#allocation2] sm:$0xff] %vm210_vm0, %v490_v0  ;;  %s423_s13 = sshll.u32 %s567_s9, 5  ;;  %s424_s14 = sshll.u32 %s567_s9, 2 }
   0xe   : > { %212 = vst.msk [vmem:[#allocation2 + $0x8] sm:$0xff] %vm210_vm0, %v490_v0  ;;  %s190_s17 = scalar_lea.vmem %s559_s0, %s423_s13  ;;  %s200_s20 = scalar_lea.vmem %s560_s1, %s424_s14 }
   0xf   : > { %213 = vst.msk [vmem:[#allocation3] sm:$0xff] %vm210_vm0, %v490_v0  ;;  %v426_v1 = vld [vmem:[%s200_s20] sm:$0xf]   ;;  %v216_v5 = vld [vmem:[%s190_s17 + $0x8] sm:$0xff]  ;;  %v419_v6 = vld [vmem:[%s190_s17 + $0x10] sm:$0xff]  ;;  %s418_s21 = sshll.u32 %s567_s9, 1 }
  0x10   : > { %214 = vst.msk [vmem:[#allocation3 + $0x8] sm:$0xff] %vm210_vm0, %v490_v0  ;;  %v215_v2 = vld [vmem:[%s190_s17] sm:$0xff]  ;;  %v427_v3 = vunpack.c.0.s8 %v426_v1  ;;  %v428_v4 = vunpack.c.1.s8 %v426_v1  ;;  %v420_v7 = vld [vmem:[%s190_s17 + $0x18] sm:$0xff]  ;;  %s205_s25 = scalar_lea.vmem %s561_s2, %s418_s21 }
  0x11   : > { %v243_v12 = vsub.f32 %v419_v6, %v215_v2  ;;  %v244_v13 = vsub.f32 %v420_v7, %v216_v5 }
  0x12   : > { %v224_v8 = vcvt.s32.f32 %v427_v3  ;;  %v225_v9 = vcvt.s32.f32 %v428_v4 }
  0x14   : > { %v239_v10 = vmul.f32 2.0, %v224_v8  ;;  %v240_v11 = vmul.f32 2.0, %v225_v9  ;;  %v267_v18 = vmul.f32 0.2, %v224_v8  ;;  %v268_v19 = vmul.f32 0.2, %v225_v9 }
  0x15   : > { %v273_v44 = vld [vmem:[#allocation2] sm:$0xff]  ;;  %v274_v45 = vld [vmem:[#allocation2 + $0x8] sm:$0xff] }
  0x16   : > { %v241_v14 = vsub.f32 1.0, %v239_v10  ;;  %v242_v15 = vsub.f32 1.0, %v240_v11  ;;  %v269_v24 = vadd.f32 0.9, %v267_v18  ;;  %v270_v25 = vadd.f32 0.9, %v268_v19 }
  0x17   : > { %v282_v28 = vld [vmem:[#allocation3] sm:$0xff]  ;;  %v283_v29 = vld [vmem:[#allocation3 + $0x8] sm:$0xff]  ;;  %v226_v10 = vlaneseq }
  0x18   : > { %v245_v16 = vmul.f32 %v243_v12, %v241_v14  ;;  %v246_v17 = vmul.f32 %v244_v13, %v242_v15  ;;  %v284_v30 = vadd.f32 %v282_v28, %v269_v24  ;;  %v285_v31 = vadd.f32 %v283_v29, %v270_v25 }
  0x19   : > { %v227_v11 = vshrl.u32 %v226_v10, 7 }
  0x1a   : > { %v251_v20 = vand.u32 2147483647, %v245_v16  ;;  %v252_v21 = vand.u32 2147483647, %v246_v17  ;;  %286 = vst.msk [vmem:[#allocation3] sm:$0xff] %vm210_vm0, %v284_v30  ;;  %v249_v36 = vmax.f32 %v245_v16, 0.0 }
  0x1b   : > { %287 = vst.msk [vmem:[#allocation3 + $0x8] sm:$0xff] %vm210_vm0, %v285_v31  ;;  %v250_v38 = vmax.f32 %v246_v17, 0.0  ;;  %vm319_vm1 = vcmp.eq.s32.totalorder %v227_v11, 0 }
  0x1c   : > { %v253_v22 = vsub.f32 0.0, %v251_v20  ;;  %v254_v23 = vsub.f32 0.0, %v252_v21 }
  0x1e   : > { %v255_v26 = vmul.f32 1.442695, %v253_v22  ;;  %v257_v27 = vmul.f32 1.442695, %v254_v23 }
  0x20   : > { %458 = vpow2.f32 %v255_v26 }
  0x21   : > { %460 = vpow2.f32 %v257_v27  ;;  %v305_v55 = vld [vmem:[#allocation3] sm:$0xff] }
  0x22   : > { %v306_v56 = vld [vmem:[#allocation3 + $0x8] sm:$0xff]  ;;  %v307_v57 = vsel %vm210_vm0, %v305_v55, 0.0 }
  0x23   : > { %v308_v58 = vsel %vm210_vm0, %v306_v56, 0.0 }
  0x24   : > { %v309_v59 = vadd.f32 %v308_v58, %v307_v57 }
  0x26   : > { %v459_v32 = vpop.eup %458 }
  0x27   : > { %v461_v33 = vpop.eup %460  ;;  %v259_v34 = vadd.f32 1.0, %v459_v32 }
  0x28   : > { %v260_v35 = vadd.f32 1.0, %v461_v33 }
  0x29   : > { %462 = vlog2.f32 %v259_v34 }
  0x2a   : > { %464 = vlog2.f32 %v260_v35 }
  0x2f   : > { %v463_v37 = vpop.eup %462 }
  0x30   : > { %v465_v39 = vpop.eup %464  ;;  %v262_v40 = vmul.f32 0.6931472, %v463_v37 }
  0x31   : > { %v264_v41 = vmul.f32 0.6931472, %v465_v39 }
  0x32   : > { %v265_v42 = vadd.f32 %v262_v40, %v249_v36 }
  0x33   : > { %v266_v43 = vadd.f32 %v264_v41, %v250_v38 }
  0x34   : > { %v275_v46 = vmul.f32 %v269_v24, %v265_v42 }
  0x35   : > { %v276_v47 = vmul.f32 %v270_v25, %v266_v43 }
  0x36   : > { %v277_v48 = vadd.f32 %v275_v46, %v273_v44 }
  0x37   : > { %v278_v49 = vadd.f32 %v276_v47, %v274_v45 }
  0x38   : > { %280 = vst.msk [vmem:[#allocation2] sm:$0xff] %vm210_vm0, %v277_v48 }
  0x39   : > { %281 = vst.msk [vmem:[#allocation2 + $0x8] sm:$0xff] %vm210_vm0, %v278_v49 }
  0x3f   : > { %v291_v50 = vld [vmem:[#allocation2] sm:$0xff] }
  0x40   : > { %v292_v51 = vld [vmem:[#allocation2 + $0x8] sm:$0xff]  ;;  %v293_v52 = vsel %vm210_vm0, %v291_v50, 0.0 }
  0x41   : > { %v294_v53 = vsel %vm210_vm0, %v292_v51, 0.0 }
  0x42   : > { %v295_v54 = vadd.f32 %v294_v53, %v293_v52 }
  0x44   : > { %296 = vadd.xlane.f32.xlu0 %v295_v54 }
  0x4c   : > { %310 = vadd.xlane.f32.xlu0 %v309_v59 }
  0xb7   : > { %v297_v60 = vpop.xlane.xlu0 %296 }
  0xb8   : > { %v298_v61 = vrot.slane %v297_v60, 4 }
  0xba   : > { %v299_v62 = vadd.f32 %v298_v61, %v297_v60 }
  0xbc   : > { %v300_v63 = vrot.slane %v299_v62, 2 }
  0xbe   : > { %v301_v0 = vadd.f32 %v300_v63, %v299_v62 }
  0xbf   : > { %v311_v1 = vpop.xlane.xlu0 %310 }
  0xc0   : > { %v312_v2 = vrot.slane %v311_v1, 4  ;;  %v302_v3 = vrot.slane %v301_v0, 1 }
  0xc2   : > { %v313_v4 = vadd.f32 %v312_v2, %v311_v1  ;;  %v303_v5 = vadd.f32 %v302_v3, %v301_v0 }
  0xc4   : > { %v314_v6 = vrot.slane %v313_v4, 2  ;;  %429 = vpush %v303_v5 }
  0xc6   : > { %v315_v7 = vadd.f32 %v314_v6, %v313_v4 }
  0xc8   : > { %v316_v8 = vrot.slane %v315_v7, 1 }
  0xca   : > { %v317_v9 = vadd.f32 %v316_v8, %v315_v7 }
  0xcc   : > { %431 = vpush %v317_v9 }
  0xf5   : > { %s430_s22 = spop %429 }
  0xf6   : > { %v320_v12 = vstv %s430_s22 }
  0xfd   : > { %s432_s26 = spop %431 }
  0xfe   : > { %v321_v13 = vstv %s432_s26 }
  0xff   : > { %v322_v14 = vsel %vm319_vm1, %v320_v12, %v321_v13 }
 0x100   : > { %323 = vst [vmem:[%s205_s25] sm:$0x3] %v322_v14 }
 0x101 PF: > { %s12_s11 = sadd.s32 1, %s488_s11   ;;  %s562_s9 = smov %s484_s10 }
 0x102   : > { %p9_p5 = scmp.ge.s32.totalorder %s12_s11, 4   ;;  %s563_s10 = smov %s565_s12 }
 0x104   :  { %11 = sbr.rel (!%p9_p5) target bundleno = 2 (0x2), region = 70 }

</bundles_post_ra>
